<compile_context>
chip_gen: v6e
topology: v6e:2x2x1
jax: 0.10.0
libtpu: 0.0.40
codegen_flags: <defaults>
</compile_context>

<pallas_src>
import jax
import jax.numpy as jnp
from jax import lax
from jax.experimental import pallas as pl
from jax.experimental.pallas import tpu as pltpu


# ----------------------------------------------------------------------------
# Pallas kernel: full X_conv compute for one tile of TB = (batch*reps) rows
# ----------------------------------------------------------------------------
def _make_x_conv_kernel(meta):
    K, dim, lift, cin = meta["K"], meta["dim"], meta["lift"], meta["cin"]
    KK = K * K
    kdim, kcin, klift = K * dim, K * cin, K * lift
    f32, bf16 = jnp.float32, jnp.bfloat16

    def kernel(x_ref, w1l_ref, b1l_ref, w2_ref, b2_ref, w3_ref, b3_ref,
               ebc_ref, wrep_ref, bc_ref, out_ref):
        x = x_ref[...]                                       # (TB, 128) bf16: [p | feat | 0]

        # fused transformation-net layer 1 + lifting SharedMLP (BN scales folded)
        h = jnp.dot(x, w1l_ref[...], preferred_element_type=f32) + b1l_ref[...]
        h = jnp.maximum(h, 0.0)                              # (TB, KK+klift) = [T1 | lift]

        # transformation-net layers 2/3; lifted features ride through identity blocks
        h = jnp.dot(h.astype(bf16), w2_ref[...], preferred_element_type=f32) + b2_ref[...]
        h = jnp.maximum(h, 0.0)
        h = jnp.dot(h.astype(bf16), w3_ref[...], preferred_element_type=f32) + b3_ref[...]

        t_bf = h[:, :KK].astype(bf16)                        # T[b, k*K + j]   (TB, KK)
        # F = [lifted (j-major) | input features (j-major)], kept f32 until the product
        f_flat = jnp.concatenate(
            [h[:, KK:KK + klift], x[:, kdim:kdim + kcin].astype(f32)], axis=-1)
        f_tiled = jnp.concatenate([f_flat] * K, axis=-1)     # (TB, K*Vf)

        # fused bmm(T, F) + Conv1d(kernel=K):
        #   out[b,o] = sum_{k,v} T[b,k,j(v)] * F[b,v] * Wc[k,c(v),o] + bias[o]
        # ebc lane-broadcasts T over all F columns in ONE wide MXU dot; wrep is the
        # conv weight replicated over j in the same column order (one wide dot).
        t_all = jnp.dot(t_bf, ebc_ref[...], preferred_element_type=f32)   # (TB, K*Vf)
        prod = (t_all * f_tiled).astype(bf16)
        out = jnp.dot(prod, wrep_ref[...], preferred_element_type=f32) + bc_ref[...]
        out_ref[...] = out.astype(out_ref.dtype)

    return kernel


# ----------------------------------------------------------------------------
# pallas_call wrapper
# ----------------------------------------------------------------------------
def x_conv_pallas(x, params):
    meta = params["meta"]
    out_pad, out_f = meta["out_pad"], meta["out_feature"]
    BR, xin_pad = x.shape

    # --- row tiling: diverge per TPU generation --------------------------------
    ROW = 16                                     # bf16 sublane packing multiple
    rup = lambda v, m: ((v + m - 1) // m) * m
    try:
        kind = jax.devices()[0].device_kind.lower()
    except Exception:
        kind = ""
    two_cores = ("v7" in kind) or ("7x" in kind)  # v7x: 2 TensorCores, 64 MiB VMEM
    cap = 1024 if two_cores else 2048             # single-TC parts: bigger tiles
    BRp = rup(BR, ROW)
    ntiles = max(1, pl.cdiv(BRp, cap))
    if two_cores and ntiles < 2 and BRp >= 2 * ROW:
        ntiles = 2                                # let the parallel axis span both TCs
    TB = rup(pl.cdiv(BRp, ntiles), ROW)
    BRp = TB * ntiles
    if BRp > BR:
        x = jnp.pad(x, ((0, BRp - BR), (0, 0)))

    weight_names = ("w1l", "b1l", "w2", "b2", "w3", "b3", "ebc", "wrep", "bc")
    weights = [params[name] for name in weight_names]

    def full_spec(a):
        nd = a.ndim
        return pl.BlockSpec(a.shape, lambda i, nd=nd: (0,) * nd)

    in_specs = [pl.BlockSpec((TB, xin_pad), lambda i: (i, 0))] \
        + [full_spec(w) for w in weights]
    out_specs = pl.BlockSpec((TB, out_pad), lambda i: (i, 0))

    cp = dict(dimension_semantics=("parallel",))
    if not two_cores:
        cp["vmem_limit_bytes"] = 64 * 1024 * 1024   # 128 MiB physical on v5e/v6e

    out = pl.pallas_call(
        _make_x_conv_kernel(meta),
        out_shape=jax.ShapeDtypeStruct((BRp, out_pad), jnp.bfloat16),
        grid=(BRp // TB,),
        in_specs=in_specs,
        out_specs=out_specs,
        compiler_params=pltpu.CompilerParams(**cp),
    )(x, *weights)
    return out[:BR, :out_f]


# ----------------------------------------------------------------------------
# Deterministic parameter init (PyTorch shapes, folded/fused for the kernel)
# ----------------------------------------------------------------------------
def init_params(key, in_feature, out_feature, num_neighbours, dim=3,
                lifting_feature=None, eps=1e-5):
    # TODO(synk): SharedMLP / MLP are not defined in the source module; assumed
    # SharedMLP = Conv1d(k=1)+BN+ReLU and MLP = Linear+BN+ReLU (standard
    # PointCNN), with fresh eval-mode BN running stats folded into the weights.
    lift = in_feature // 4 if lifting_feature is None else lifting_feature
    K = num_neighbours
    KK = K * K
    cin = in_feature
    ctot = cin + lift
    kdim, kcin, klift = K * dim, K * cin, K * lift
    Vf = klift + kcin
    rup = lambda v, m: ((v + m - 1) // m) * m
    out_pad = rup(out_feature, 128)
    xin_pad = rup(kdim + kcin, 128)

    ks = jax.random.split(key, 10)
    nrm = lambda k, s, sc=0.1: sc * jax.random.normal(k, s, dtype=jnp.float32)

    def bn_fold(bias, c):
        gamma = jnp.ones((c,), jnp.float32); beta = jnp.zeros((c,), jnp.float32)
        mean = jnp.zeros((c,), jnp.float32); var = jnp.ones((c,), jnp.float32)
        s = gamma / jnp.sqrt(var + eps)
        t = (bias - mean) * s + beta
        return s, t

    # lifting_network = SharedMLP(dim, lift): Conv1d(dim, lift, 1) + BN + ReLU
    wl_t = nrm(ks[0], (lift, dim)); bl = nrm(ks[1], (lift,))
    ls, lt = bn_fold(bl, lift)
    wl = wl_t.T * ls[None, :]                              # (dim, lift), scale folded
    wl_bd = jnp.kron(jnp.eye(K, dtype=jnp.float32), wl)    # (K*dim, K*lift) block-diag
    lt_tiled = jnp.tile(lt, K)                             # (K*lift,)

    # transformation_network = MLP(dim*K, KK), MLP(KK, KK), Linear(KK, KK), BN(KK)
    w1_t = nrm(ks[2], (KK, kdim)); b1 = nrm(ks[3], (KK,))
    w2_t = nrm(ks[4], (KK, KK));   b2 = nrm(ks[5], (KK,))
    w3_t = nrm(ks[6], (KK, KK));   b3 = nrm(ks[7], (KK,))
    s1, t1 = bn_fold(b1, KK); s2, t2 = bn_fold(b2, KK); s3, t3 = bn_fold(b3, KK)
    w1 = w1_t.T * s1[None, :]                              # (kdim, KK)
    w2 = w2_t.T * s2[None, :]
    w3 = w3_t.T * s3[None, :]

    # fused first layer: packed x (p | feat | pad) -> [T1(KK) | lift(klift)]
    # rows for the feature / pad lanes are zero, so they cannot pollute the result.
    w1l = jnp.concatenate([w1, wl_bd], axis=1)             # (kdim, KK+klift)
    w1l = jnp.pad(w1l, ((0, xin_pad - kdim), (0, 0)))      # (xin_pad, KK+klift)
    b1l = jnp.concatenate([t1, lt_tiled])[None, :]         # (1, KK+klift)

    # layers 2/3: lifted features ride along through an identity block (>=0, so
    # the layer-2 ReLU is a no-op on them; layer 3 has no ReLU).
    eye_l = jnp.eye(klift, dtype=jnp.float32)
    def ride(wT):
        m = jnp.zeros((KK + klift, KK + klift), jnp.float32)
        return m.at[:KK, :KK].set(wT).at[KK:, KK:].set(eye_l)
    w2p, w3p = ride(w2), ride(w3)
    b2p = jnp.concatenate([t2, jnp.zeros((klift,), jnp.float32)])[None, :]
    b3p = jnp.concatenate([t3, jnp.zeros((klift,), jnp.float32)])[None, :]

    # conv = Conv1d(in_feature + lift, out_feature, K): torch weight (out, ctot, K)
    wc_t = nrm(ks[8], (out_feature, ctot, K)); bc = nrm(ks[9], (out_feature,))
    wc = jnp.transpose(wc_t, (2, 1, 0))                    # wc[k, c, o] = wc_t[o, c, k]
    wc = jnp.pad(wc, ((0, 0), (0, 0), (0, out_pad - out_feature)))
    bc_pad = jnp.pad(bc, (0, out_pad - out_feature))[None, :]

    # F column layout inside the kernel: [lift (j-major) | feat (j-major)] (Vf cols).
    j_of_v = jnp.concatenate([jnp.repeat(jnp.arange(K), lift),
                              jnp.repeat(jnp.arange(K), cin)])          # (Vf,)
    c_of_v = jnp.concatenate([jnp.tile(jnp.arange(lift), K),
                              lift + jnp.tile(jnp.arange(cin), K)])     # (Vf,)
    # fused T-expansion: ebc[u, k*Vf+v] = 1 iff u == k*K + j_of_v[v]  (ONE wide dot)
    kkj = jnp.arange(K)[:, None] * K + j_of_v[None, :]                  # (K, Vf)
    ebc = (jnp.arange(KK)[:, None, None] == kkj[None, :, :]).reshape(KK, K * Vf)
    # fused conv weight in the same column order: wrep[k*Vf+v, o] = wc[k, c_of_v[v], o]
    wrep = wc[:, c_of_v, :].reshape(K * Vf, out_pad)

    bf = lambda a: a.astype(jnp.bfloat16)
    return dict(
        w1l=bf(w1l), b1l=b1l,
        w2=bf(w2p), b2=b2p,
        w3=bf(w3p), b3=b3p,
        ebc=bf(ebc), wrep=bf(wrep), bc=bc_pad,
        meta=dict(K=K, dim=dim, lift=lift, cin=cin,
                  out_feature=out_feature, out_pad=out_pad, xin_pad=xin_pad),
    )


# ----------------------------------------------------------------------------
# PointCNNLayer.forward glue (knn / gather / packing in JAX, X_conv in Pallas)
# ----------------------------------------------------------------------------
def pointcnn_layer(points, features, params, key,
                   num_neighbours, num_representitives, dilation=1):
    b, n, dim = points.shape
    K = num_neighbours
    cin = features.shape[-1]
    k_total = dilation * K

    # knn(points, dilation*K), excluding oneself. Squared distances via the
    # ||x||^2 + ||y||^2 - 2 x.y matmul form (MXU, no (b,n,n,dim) broadcast).
    sq = jnp.sum(points * points, axis=-1)                     # (b, n)
    d2 = sq[:, :, None] + sq[:, None, :] \
        - 2.0 * jnp.einsum("bnd,bmd->bnm", points, points)
    _, idx = lax.top_k(-d2, k_total + 1)
    nn_idx = idx[:, :, 1:]                                     # (b, n, dilation*K)

    # TODO(synk): torch.randperm replaced by jax.random.permutation (fixed key).
    key_dil, key_rep = jax.random.split(key)
    if dilation > 1:
        sel = jax.random.permutation(key_dil, k_total)[:K]
        nn_idx = nn_idx[:, :, sel]

    rep_idx = jax.random.permutation(key_rep, n)[:num_representitives]
    rep_pos = points[:, rep_idx]                               # (b, R, dim)
    neighbour_idx = nn_idx[:, rep_idx, :]                      # (b, R, K)
    bidx = jnp.arange(b)[:, None, None]
    neighbour_pos = points[bidx, neighbour_idx]                # (b, R, K, dim)
    neighbour_feat = features[bidx, neighbour_idx]             # (b, R, K, cin)

    # pack one lane-dense bf16 operand per row: [p_local (K*dim) | feat (K*cin) | 0]
    # (the subtraction stays f32; a single cast to bf16 afterwards)
    BR = b * num_representitives
    p_local = (neighbour_pos - rep_pos[:, :, None, :]).reshape(BR, K * dim)
    feat_flat = neighbour_feat.reshape(BR, K * cin)
    x = jnp.concatenate([p_local, feat_flat], axis=-1).astype(jnp.bfloat16)
    xin_pad = params["meta"]["xin_pad"]
    x = jnp.pad(x, ((0, 0), (0, xin_pad - x.shape[1])))

    new_features = x_conv_pallas(x, params)                    # (BR, out_feature) bf16
    # kernel writes bf16 (halved HBM writeback); restore module dtype outside it
    new_features = new_features.astype(jnp.float32)
    return rep_pos, new_features.reshape(b, num_representitives, -1)


# ----------------------------------------------------------------------------
if __name__ == "__main__":
    key = jax.random.PRNGKey(0)
    k_param, k_pts, k_feat, k_fwd = jax.random.split(key, 4)

    b, n, dim = 2, 32, 3
    in_feature, out_feature = 8, 16
    num_neighbours, num_representitives, dilation = 8, 8, 1

    params = init_params(k_param, in_feature, out_feature, num_neighbours, dim=dim)
    points = jax.random.normal(k_pts, (b, n, dim), dtype=jnp.float32)
    features = jax.random.normal(k_feat, (b, n, in_feature), dtype=jnp.float32)

    rep_pos, new_features = pointcnn_layer(
        points, features, params, k_fwd,
        num_neighbours, num_representitives, dilation)
    jax.block_until_ready((rep_pos, new_features))

    assert rep_pos.shape == (b, num_representitives, dim)
    assert new_features.shape == (b, num_representitives, out_feature)
    assert bool(jnp.all(jnp.isfinite(new_features)))
    print("KERNEL_OK")
</pallas_src>

<mosaic_0001>
module attributes {stable_mosaic.version = 11 : i64} {
  func.func @kernel(%arg0: i32, %arg1: memref<16x128xbf16, #tpu.memory_space<vmem>>, %arg2: memref<128x80xbf16, #tpu.memory_space<vmem>>, %arg3: memref<1x80xf32, #tpu.memory_space<vmem>>, %arg4: memref<80x80xbf16, #tpu.memory_space<vmem>>, %arg5: memref<1x80xf32, #tpu.memory_space<vmem>>, %arg6: memref<80x80xbf16, #tpu.memory_space<vmem>>, %arg7: memref<1x80xf32, #tpu.memory_space<vmem>>, %arg8: memref<64x640xbf16, #tpu.memory_space<vmem>>, %arg9: memref<640x128xbf16, #tpu.memory_space<vmem>>, %arg10: memref<1x128xf32, #tpu.memory_space<vmem>>, %arg11: memref<16x128xbf16, #tpu.memory_space<vmem>>) attributes {dimension_semantics = [#tpu.dimension_semantics<parallel>], iteration_bounds = array<i64: 1>, scalar_prefetch = 0 : i64, scratch_operands = 0 : i64, tpu.core_type = #tpu.core_type<tc>, window_params = [{transform_indices = @transform_0, window_bounds = array<i64: 16, 128>}, {pipeline_mode = #tpu.pipeline_mode<synchronous>, transform_indices = @transform_1, window_bounds = array<i64: 128, 80>}, {pipeline_mode = #tpu.pipeline_mode<synchronous>, transform_indices = @transform_2, window_bounds = array<i64: 1, 80>}, {pipeline_mode = #tpu.pipeline_mode<synchronous>, transform_indices = @transform_3, window_bounds = array<i64: 80, 80>}, {pipeline_mode = #tpu.pipeline_mode<synchronous>, transform_indices = @transform_4, window_bounds = array<i64: 1, 80>}, {pipeline_mode = #tpu.pipeline_mode<synchronous>, transform_indices = @transform_5, window_bounds = array<i64: 80, 80>}, {pipeline_mode = #tpu.pipeline_mode<synchronous>, transform_indices = @transform_6, window_bounds = array<i64: 1, 80>}, {pipeline_mode = #tpu.pipeline_mode<synchronous>, transform_indices = @transform_7, window_bounds = array<i64: 64, 640>}, {pipeline_mode = #tpu.pipeline_mode<synchronous>, transform_indices = @transform_8, window_bounds = array<i64: 640, 128>}, {pipeline_mode = #tpu.pipeline_mode<synchronous>, transform_indices = @transform_9, window_bounds = array<i64: 1, 128>}, {transform_indices = @transform_10, window_bounds = array<i64: 16, 128>}]} {
    %c0 = arith.constant 0 : index
    %c0_0 = arith.constant 0 : index
    %0 = vector.load %arg1[%c0, %c0_0] : memref<16x128xbf16, #tpu.memory_space<vmem>>, vector<16x128xbf16>
    %c0_1 = arith.constant 0 : index
    %c0_2 = arith.constant 0 : index
    %1 = vector.load %arg2[%c0_1, %c0_2] : memref<128x80xbf16, #tpu.memory_space<vmem>>, vector<128x80xbf16>
    %cst = arith.constant dense<0.000000e+00> : vector<16x80xf32>
    %2 = tpu.matmul %0, %1, %cst {dimension_numbers = #tpu.dot_dimension_numbers<[1], [0], [0], [1], [0, 0, 1, 1], [], []>} : vector<16x128xbf16>, vector<128x80xbf16>, vector<16x80xf32> -> vector<16x80xf32>
    %c0_3 = arith.constant 0 : index
    %c0_4 = arith.constant 0 : index
    %3 = vector.load %arg3[%c0_3, %c0_4] : memref<1x80xf32, #tpu.memory_space<vmem>>, vector<1x80xf32>
    %4 = vector.broadcast %3 : vector<1x80xf32> to vector<16x80xf32>
    %5 = arith.addf %2, %4 : vector<16x80xf32>
    %cst_5 = arith.constant 0.000000e+00 : f32
    %6 = vector.broadcast %cst_5 : f32 to vector<16x80xf32>
    %7 = arith.maximumf %5, %6 : vector<16x80xf32>
    %8 = arith.truncf %7 : vector<16x80xf32> to vector<16x80xbf16>
    %c0_6 = arith.constant 0 : index
    %c0_7 = arith.constant 0 : index
    %9 = vector.load %arg4[%c0_6, %c0_7] : memref<80x80xbf16, #tpu.memory_space<vmem>>, vector<80x80xbf16>
    %cst_8 = arith.constant dense<0.000000e+00> : vector<16x80xf32>
    %10 = tpu.matmul %8, %9, %cst_8 {dimension_numbers = #tpu.dot_dimension_numbers<[1], [0], [0], [1], [0, 0, 1, 1], [], []>} : vector<16x80xbf16>, vector<80x80xbf16>, vector<16x80xf32> -> vector<16x80xf32>
    %c0_9 = arith.constant 0 : index
    %c0_10 = arith.constant 0 : index
    %11 = vector.load %arg5[%c0_9, %c0_10] : memref<1x80xf32, #tpu.memory_space<vmem>>, vector<1x80xf32>
    %12 = vector.broadcast %11 : vector<1x80xf32> to vector<16x80xf32>
    %13 = arith.addf %10, %12 : vector<16x80xf32>
    %cst_11 = arith.constant 0.000000e+00 : f32
    %14 = vector.broadcast %cst_11 : f32 to vector<16x80xf32>
    %15 = arith.maximumf %13, %14 : vector<16x80xf32>
    %16 = arith.truncf %15 : vector<16x80xf32> to vector<16x80xbf16>
    %c0_12 = arith.constant 0 : index
    %c0_13 = arith.constant 0 : index
    %17 = vector.load %arg6[%c0_12, %c0_13] : memref<80x80xbf16, #tpu.memory_space<vmem>>, vector<80x80xbf16>
    %cst_14 = arith.constant dense<0.000000e+00> : vector<16x80xf32>
    %18 = tpu.matmul %16, %17, %cst_14 {dimension_numbers = #tpu.dot_dimension_numbers<[1], [0], [0], [1], [0, 0, 1, 1], [], []>} : vector<16x80xbf16>, vector<80x80xbf16>, vector<16x80xf32> -> vector<16x80xf32>
    %c0_15 = arith.constant 0 : index
    %c0_16 = arith.constant 0 : index
    %19 = vector.load %arg7[%c0_15, %c0_16] : memref<1x80xf32, #tpu.memory_space<vmem>>, vector<1x80xf32>
    %20 = vector.broadcast %19 : vector<1x80xf32> to vector<16x80xf32>
    %21 = arith.addf %18, %20 : vector<16x80xf32>
    %22 = vector.extract_strided_slice %21 {offsets = [0, 0], sizes = [16, 64], strides = [1, 1]} : vector<16x80xf32> to vector<16x64xf32>
    %23 = arith.truncf %22 : vector<16x64xf32> to vector<16x64xbf16>
    %24 = vector.extract_strided_slice %21 {offsets = [0, 64], sizes = [16, 16], strides = [1, 1]} : vector<16x80xf32> to vector<16x16xf32>
    %25 = vector.extract_strided_slice %0 {offsets = [0, 24], sizes = [16, 64], strides = [1, 1]} : vector<16x128xbf16> to vector<16x64xbf16>
    %26 = arith.extf %25 : vector<16x64xbf16> to vector<16x64xf32>
    %27 = tpu.concatenate %24, %26 in 1 : vector<16x16xf32>, vector<16x64xf32> -> vector<16x80xf32>
    %28 = tpu.concatenate %27, %27, %27, %27, %27, %27, %27, %27 in 1 : vector<16x80xf32>, vector<16x80xf32>, vector<16x80xf32>, vector<16x80xf32>, vector<16x80xf32>, vector<16x80xf32>, vector<16x80xf32>, vector<16x80xf32> -> vector<16x640xf32>
    %c0_17 = arith.constant 0 : index
    %c0_18 = arith.constant 0 : index
    %29 = vector.load %arg8[%c0_17, %c0_18] : memref<64x640xbf16, #tpu.memory_space<vmem>>, vector<64x640xbf16>
    %cst_19 = arith.constant dense<0.000000e+00> : vector<16x640xf32>
    %30 = tpu.matmul %23, %29, %cst_19 {dimension_numbers = #tpu.dot_dimension_numbers<[1], [0], [0], [1], [0, 0, 1, 1], [], []>} : vector<16x64xbf16>, vector<64x640xbf16>, vector<16x640xf32> -> vector<16x640xf32>
    %31 = arith.mulf %30, %28 : vector<16x640xf32>
    %32 = arith.truncf %31 : vector<16x640xf32> to vector<16x640xbf16>
    %c0_20 = arith.constant 0 : index
    %c0_21 = arith.constant 0 : index
    %33 = vector.load %arg9[%c0_20, %c0_21] : memref<640x128xbf16, #tpu.memory_space<vmem>>, vector<640x128xbf16>
    %cst_22 = arith.constant dense<0.000000e+00> : vector<16x128xf32>
    %34 = tpu.matmul %32, %33, %cst_22 {dimension_numbers = #tpu.dot_dimension_numbers<[1], [0], [0], [1], [0, 0, 1, 1], [], []>} : vector<16x640xbf16>, vector<640x128xbf16>, vector<16x128xf32> -> vector<16x128xf32>
    %c0_23 = arith.constant 0 : index
    %c0_24 = arith.constant 0 : index
    %35 = vector.load %arg10[%c0_23, %c0_24] : memref<1x128xf32, #tpu.memory_space<vmem>>, vector<1x128xf32>
    %36 = vector.broadcast %35 : vector<1x128xf32> to vector<16x128xf32>
    %37 = arith.addf %34, %36 : vector<16x128xf32>
    %38 = arith.truncf %37 : vector<16x128xf32> to vector<16x128xbf16>
    %c0_25 = arith.constant 0 : index
    %c0_26 = arith.constant 0 : index
    %39 = vector.load %arg11[%c0_25, %c0_26] : memref<16x128xbf16, #tpu.memory_space<vmem>>, vector<16x128xbf16>
    tpu.vector_store %arg11[%c0_25, %c0_26], %38 {strides = array<i32>} : memref<16x128xbf16, #tpu.memory_space<vmem>>, vector<16x128xbf16>,
    return
  }
  func.func @transform_0(%arg0: i32) -> (i32, i32) {
    %c0_i32 = arith.constant 0 : i32
    %c0_i32_0 = arith.constant 0 : i32
    return %arg0, %c0_i32 : i32, i32
  }
  func.func @transform_1(%arg0: i32) -> (i32, i32) {
    %c0_i32 = arith.constant 0 : i32
    %c0_i32_0 = arith.constant 0 : i32
    %c0_i32_1 = arith.constant 0 : i32
    return %c0_i32, %c0_i32_0 : i32, i32
  }
  func.func @transform_2(%arg0: i32) -> (i32, i32) {
    %c0_i32 = arith.constant 0 : i32
    %c0_i32_0 = arith.constant 0 : i32
    %c0_i32_1 = arith.constant 0 : i32
    return %c0_i32, %c0_i32_0 : i32, i32
  }
  func.func @transform_3(%arg0: i32) -> (i32, i32) {
    %c0_i32 = arith.constant 0 : i32
    %c0_i32_0 = arith.constant 0 : i32
    %c0_i32_1 = arith.constant 0 : i32
    return %c0_i32, %c0_i32_0 : i32, i32
  }
  func.func @transform_4(%arg0: i32) -> (i32, i32) {
    %c0_i32 = arith.constant 0 : i32
    %c0_i32_0 = arith.constant 0 : i32
    %c0_i32_1 = arith.constant 0 : i32
    return %c0_i32, %c0_i32_0 : i32, i32
  }
  func.func @transform_5(%arg0: i32) -> (i32, i32) {
    %c0_i32 = arith.constant 0 : i32
    %c0_i32_0 = arith.constant 0 : i32
    %c0_i32_1 = arith.constant 0 : i32
    return %c0_i32, %c0_i32_0 : i32, i32
  }
  func.func @transform_6(%arg0: i32) -> (i32, i32) {
    %c0_i32 = arith.constant 0 : i32
    %c0_i32_0 = arith.constant 0 : i32
    %c0_i32_1 = arith.constant 0 : i32
    return %c0_i32, %c0_i32_0 : i32, i32
  }
  func.func @transform_7(%arg0: i32) -> (i32, i32) {
    %c0_i32 = arith.constant 0 : i32
    %c0_i32_0 = arith.constant 0 : i32
    %c0_i32_1 = arith.constant 0 : i32
    return %c0_i32, %c0_i32_0 : i32, i32
  }
  func.func @transform_8(%arg0: i32) -> (i32, i32) {
    %c0_i32 = arith.constant 0 : i32
    %c0_i32_0 = arith.constant 0 : i32
    %c0_i32_1 = arith.constant 0 : i32
    return %c0_i32, %c0_i32_0 : i32, i32
  }
  func.func @transform_9(%arg0: i32) -> (i32, i32) {
    %c0_i32 = arith.constant 0 : i32
    %c0_i32_0 = arith.constant 0 : i32
    %c0_i32_1 = arith.constant 0 : i32
    return %c0_i32, %c0_i32_0 : i32, i32
  }
  func.func @transform_10(%arg0: i32) -> (i32, i32) {
    %c0_i32 = arith.constant 0 : i32
    %c0_i32_0 = arith.constant 0 : i32
    return %arg0, %c0_i32 : i32, i32
  }
}

</mosaic_0001>

<bundles_post_ra>
// kernel: tpu_custom_call.1
= control target key start
LH: loop header
LB: loop body
LE: loop exit
PB: predicated region body
PF: predicated region fallthrough
CT: control target
= control target key end

     0   :  { %15 = vsyncpa [#allocation3], 0  ;;  %s1876_s0 = inlined_call_operand.vmem [shape: bf16[16,128], index: 0, kind: input, shape index: {}]   ;;  %s1877_s1 = inlined_call_operand.vmem [shape: bf16[128,80], index: 1, kind: input, shape index: {}]   ;;  %s1878_s2 = inlined_call_operand.vmem [shape: f32[1,80], index: 2, kind: input, shape index: {}]   ;;  %s1879_s3 = inlined_call_operand.vmem [shape: bf16[80,80], index: 3, kind: input, shape index: {}]   ;;  %s1880_s4 = inlined_call_operand.vmem [shape: f32[1,80], index: 4, kind: input, shape index: {}]   ;;  %s1881_s5 = inlined_call_operand.vmem [shape: bf16[80,80], index: 5, kind: input, shape index: {}]   ;;  %s1882_s6 = inlined_call_operand.vmem [shape: f32[1,80], index: 6, kind: input, shape index: {}]   ;;  %s1883_s7 = inlined_call_operand.hbm [shape: bf16[64,640], index: 7, kind: input, shape index: {}]   ;;  %s1884_s8 = inlined_call_operand.hbm [shape: bf16[640,128], index: 8, kind: input, shape index: {}]   ;;  %s1885_s9 = inlined_call_operand.vmem [shape: f32[1,128], index: 9, kind: input, shape index: {}]   ;;  %s1886_s10 = inlined_call_operand.hbm [shape: bf16[16,128], index: 10, kind: output, shape index: {}]  }
   0x1   :  { %16 = vsyncpa [#allocation6], 0 }
   0x2   :  { %17 = vsyncpa [#allocation4], 0  ;;  %s1642_s13 = smov [#allocation2]  }
   0x3   :  { %s37_s14 = sshll.u32 %s1642_s13, 4  ;;  %s38_s14 = int_to_ptr.vmem [resolvable:$true] %s37_s14 }
   0x4   :  { %s1584_s15 = scalar_lea.vmem %s38_s14, 2560  ;;  %p1589_p1 = scmp.lt.s32.totalorder %s38_s14, %s38_s14 }
   0x5   :  { %p1585_p0 = scmp.ne.s32.totalorder %s38_s14, %s1584_s15  ;;  %p1590_p2 = scmp.lt.s32.totalorder %s1584_s15, %s1584_s15 }
   0x7   :  { %p1591_p3 = por %p1590_p2, %p1589_p1 }
   0x9   :  { %p1592_p4 = pnand %p1591_p3, %p1585_p0 }
   0xb   :  { %1595 = shalt.err (!%p1592_p4)
}
   0xc   :  { %s1643_s16 = smov 320   ;;  %s1644_s17 = smov 20  }
   0xd   :  { %43 = dma.hbm_to_vmem [thread:$0]  %s1883_s7, 2560, %s38_s14, [#allocation3], %s1643_s16, %s1643_s16, %s1644_s17  }
   0xe   :  { %s1645_s20 = smov [#allocation5]  }
   0xf   :  { %s49_s21 = sshll.u32 %s1645_s20, 4  ;;  %s50_s21 = int_to_ptr.vmem [resolvable:$true] %s49_s21 }
  0x10   :  { %s1604_s22 = scalar_lea.vmem %s50_s21, 5120  ;;  %p1609_p6 = scmp.lt.s32.totalorder %s50_s21, %s50_s21 }
  0x11   :  { %p1605_p5 = scmp.ne.s32.totalorder %s50_s21, %s1604_s22  ;;  %p1610_p7 = scmp.lt.s32.totalorder %s1604_s22, %s1604_s22 }
  0x13   :  { %p1611_p8 = por %p1610_p7, %p1609_p6 }
  0x15   :  { %p1612_p9 = pnand %p1611_p8, %p1605_p5 }
  0x17   :  { %1615 = shalt.err (!%p1612_p9)
}
  0x18   :  { %s1646_s23 = smov 64   ;;  %s1647_s24 = smov 4  }
  0x19   :  { %55 = dma.hbm_to_vmem [thread:$0]  %s1884_s8, 5120, %s50_s21, [#allocation6], %s1646_s23, %s1646_s23, %s1647_s24  }
  0x1a   :  { %1636 = dma.done.wait [#allocation3], 2560  }
  0x1b   :  { %1637 = vsyncadd [#allocation3], 4294964736 }
  0x1c   :  { %1638 = dma.done.wait [#allocation6], 5120  }
  0x1d   :  { %1639 = vsyncadd [#allocation6], 4294962176  ;;  %v1648_v0 = vmov 0.0   ;;  %vm1649_vm0 = vmmov 0   ;;  %v1488_v1 = vld [vmem:[%s1877_s1 + $0x38] sm:$0xff]   ;;  %v1489_v2 = vld [vmem:[%s1877_s1 + $0x30] sm:$0xff]  }
  0x1e   :  { %1386 = vmatprep.subr.bf16.mxu0 %v1648_v0  ;;  %1402 = vmatprep.mubr.msk.bf16.mxu0 %vm1649_vm0, %v1648_v0  ;;  %v1490_v3 = vld [vmem:[%s1877_s1 + $0x28] sm:$0xff]   ;;  %v1497_v4 = vld [vmem:[%s1879_s3 + $0x20] sm:$0xff]   ;;  %v1498_v6 = vld [vmem:[%s1879_s3 + $0x18] sm:$0xff]   ;;  %vm235_vm1 = vcmask 654336   ;;  %v1651_v52 = vmov 0   ;;  %vm448_vm2 = vcmask 523264  }
  0x1f   :  { %1406 = vmatprep.subr.bf16.mxu1 %v1648_v0  ;;  %1416 = vmatprep.mubr.msk.bf16.mxu1 %vm1649_vm0, %v1648_v0  ;;  %v1491_v5 = vld [vmem:[%s1877_s1 + $0x20] sm:$0xff]   ;;  %v1492_v7 = vld [vmem:[%s1877_s1 + $0x18] sm:$0xff]   ;;  %v1493_v8 = vld [vmem:[%s1877_s1 + $0x10] sm:$0xff]   ;;  %vm393_vm3 = vcmask 130048   ;;  %s1653_s26 = smov 32   ;;  %s1654_s7 = smov 112  }
  0x20   :  { %1387 = vmatpush3.bf16.msra.mxu0 %v1488_v1  ;;  %1407 = vmatpush3.bf16.msra.mxu1 %v1497_v4  ;;  %v1494_v9 = vld [vmem:[%s1877_s1 + $0x8] sm:$0xff]   ;;  %v1495_v10 = vld [vmem:[%s1877_s1] sm:$0xff]   ;;  %v1499_v12 = vld [vmem:[%s1879_s3 + $0x10] sm:$0xff]   ;;  %s1655_s27 = smov 16   ;;  %s1656_s8 = smov 96   ;;  %vm442_vm4 = vcmask 261120  }
  0x21   :  { %1388 = vmatprep.subr.bf16.mxu0 %v1648_v0  ;;  %1408 = vmatprep.subr.bf16.mxu1 %v1648_v0  ;;  %v1770_v11 = vld [vmem:[%s1876_s0] sm:$0xff]   ;;  %v1500_v13 = vld [vmem:[%s1879_s3 + $0x8] sm:$0xff]   ;;  %v1503_v26 = vld [vmem:[%s1881_s5 + $0x18] sm:$0xff]   ;;  %s1657_s28 = smov 48   ;;  %vm445_vm5 = vcmask 916480   ;;  %vm453_vm6 = vcmask 785408  }
  0x22   :  { %v1501_v14 = vld [vmem:[%s1879_s3] sm:$0xff]   ;;  %v1504_v27 = vld [vmem:[%s1881_s5 + $0x10] sm:$0xff]   ;;  %v1505_v28 = vld [vmem:[%s1881_s5 + $0x8] sm:$0xff]   ;;  %v375_v44 = vunpack.c.l.bf16 %v1770_v11  ;;  %v376_v45 = vunpack.c.h.bf16 %v1770_v11  ;;  %vm456_vm7 = vcmask 392192   ;;  %s1658_s0 = smov [#allocation7]  }
  0x23   :  { %v1210_v15 = vld [vmem:[%s1878_s2] ss:$0 sm:$0xff]  ;;  %v1507_v30 = vld [vmem:[#allocation2 + $0x78] ss:$20 sps:$4 sm:$0xff]   ;;  %v1509_v31 = vld [vmem:[#allocation2 + $0x7c] ss:$20 sps:$4 sm:$0xff]  }
  0x24   :  { %1389 = vmatpush3.bf16.msra.mxu0 %v1489_v2  ;;  %1409 = vmatpush3.bf16.msra.mxu1 %v1498_v6  ;;  %v1502_v24 = vld [vmem:[%s1881_s5 + $0x20] sm:$0xff]   ;;  %v1512_v32 = vld [vmem:[#allocation2 + $0x54] ss:$20 sps:$4 sm:$0xff]   ;;  %v1483_v48 = vpack.i.bf16 %v376_v45, %v375_v44  ;;  %v1524_v62 = vld [vmem:[#allocation2 + $0x5c] ss:$20 sps:$4 sm:$0xff]   ;;  %s1197_s30 = sshll.u32 %s1658_s0, 4  ;;  %s1198_s30 = int_to_ptr.vmem [resolvable:$true] %s1197_s30 }
  0x25   :  { %1390 = vmatprep.subr.bf16.mxu0 %v1648_v0  ;;  %1410 = vmatprep.subr.bf16.mxu1 %v1648_v0  ;;  %v1506_v29 = vld [vmem:[%s1881_s5] sm:$0xff]   ;;  %v1513_v47 = vld [vmem:[#allocation2 + $0x28] ss:$20 sps:$4 sm:$0xff]   ;;  %v1522_v63 = vld [vmem:[#allocation2 + $0x58] ss:$20 sps:$4 sm:$0xff]   ;;  %s1616_s11 = scalar_lea.vmem %s1198_s30, 128  ;;  %p1621_p11 = scmp.lt.s32.totalorder %s1198_s30, %s1198_s30 }
  0x26   :  { %v1510_v33 = vld [vmem:[#allocation2 + $0x50] ss:$20 sps:$4 sm:$0xff]   ;;  %v1220_v34 = vld [vmem:[%s1880_s4] ss:$0 sm:$0xff]  ;;  %s1650_s4 = smov 120   ;;  %v1564_v44 = vld [vmem:[#allocation5 + $0xc8] sm:$0xff]   ;;  %p1617_p10 = scmp.ne.s32.totalorder %s1198_s30, %s1616_s11 }
  0x27   :  { %v1515_v46 = vld [vmem:[#allocation2 + $0x2c] ss:$20 sps:$4 sm:$0xff]   ;;  %1484 = vrot.lane.b32.xlu1 %v1483_v48, %s1650_s4  ;;  %v1518_v49 = vld [vmem:[#allocation2 + $0x4] ss:$20 sps:$4 sm:$0xff]   ;;  %v1527_v1 = vld [vmem:[#allocation2 + $0x34] ss:$20 sps:$4 sm:$0xff]   ;;  %p1622_p12 = scmp.lt.s32.totalorder %s1616_s11, %s1616_s11 }
  0x28   :  { %1391 = vmatpush3.bf16.msra.mxu0 %v1490_v3  ;;  %1411 = vmatpush3.bf16.msra.mxu1 %v1499_v12  ;;  %v1516_v50 = vld [vmem:[#allocation2] ss:$20 sps:$4 sm:$0xff]   ;;  %v1521_v51 = vld [vmem:[#allocation2 + $0x84] ss:$20 sps:$4 sm:$0xff]   ;;  %v1528_v4 = vld [vmem:[#allocation2 + $0x8] ss:$20 sps:$4 sm:$0xff]  }
  0x29   :  { %1392 = vmatprep.subr.bf16.mxu0 %v1648_v0  ;;  %1412 = vmatprep.subr.bf16.mxu1 %v1648_v0  ;;  %v1227_v53 = vld [vmem:[%s1882_s6] ss:$0 sm:$0xff]  ;;  %v1525_v2 = vld [vmem:[#allocation2 + $0x30] ss:$20 sps:$4 sm:$0xff]   ;;  %s1652_s6 = smov 80   ;;  %v1566_v45 = vld [vmem:[#allocation5 + $0x88] sm:$0xff]   ;;  %p1623_p13 = por %p1622_p12, %p1621_p11 }
  0x2a   :  { %v1519_v60 = vld [vmem:[#allocation2 + $0x80] ss:$20 sps:$4 sm:$0xff]  }
  0x2b   :  { %v1530_v3 = vld [vmem:[#allocation2 + $0xc] ss:$20 sps:$4 sm:$0xff]   ;;  %v1538_v12 = vld [vmem:[#allocation5 + $0x30] sm:$0xff]   ;;  %p1624_p0 = pnand %p1623_p13, %p1617_p10 }
  0x2c   :  { %1393 = vmatpush3.bf16.msra.mxu0 %v1491_v5  ;;  %1413 = vmatpush3.bf16.msra.mxu1 %v1500_v13  ;;  %v1531_v5 = vld [vmem:[#allocation2 + $0x88] ss:$20 sps:$4 sm:$0xff]   ;;  %v1532_v6 = vld [vmem:[#allocation2 + $0x60] ss:$20 sps:$4 sm:$0xff]  }
  0x2d   :  { %1394 = vmatprep.subr.bf16.mxu0 %v1648_v0  ;;  %1414 = vmatprep.subr.bf16.mxu1 %v1648_v0  ;;  %v1539_v13 = vld [vmem:[#allocation5 + $0x68] sm:$0xff]  }
  0x30   :  { %1395 = vmatpush3.bf16.msra.mxu0 %v1492_v7  ;;  %1415 = vmatpush3.bf16.msra.mxu1 %v1501_v14  ;;  %v1533_v7 = vld [vmem:[#allocation2 + $0x38] ss:$20 sps:$4 sm:$0xff]  }
  0x31   :  { %1396 = vmatprep.subr.bf16.mxu0 %v1648_v0  ;;  %1420 = vmatprep.subr.bf16.mxu1 %v1648_v0  ;;  %v1540_v14 = vld [vmem:[#allocation5 + $0x28] sm:$0xff]  }
  0x34   :  { %1397 = vmatpush3.bf16.msra.mxu0 %v1493_v8  ;;  %v1534_v8 = vld [vmem:[#allocation2 + $0x10] ss:$20 sps:$4 sm:$0xff]  }
  0x35   :  { %1398 = vmatprep.subr.bf16.mxu0 %v1648_v0 }
  0x38   :  { %1399 = vmatpush3.bf16.msra.mxu0 %v1494_v9  ;;  %v1535_v9 = vld [vmem:[#allocation5 + $0x78] sm:$0xff]  }
  0x39   :  { %1400 = vmatprep.subr.bf16.mxu0 %v1648_v0 }
  0x3c   :  { %1401 = vmatpush3.bf16.msra.mxu0 %v1495_v10  ;;  %v1536_v10 = vld [vmem:[#allocation5 + $0x38] sm:$0xff]  }
  0x3d   :  { %598 = vmatprep.subr.bf16.mxu0 %v1509_v31  ;;  %v1555_v31 = vld [vmem:[#allocation5 + $0xe0] sm:$0xff]  }
  0x3f   :  { %1403 = vmatmul.mubr.bf16.vlgmr.msra.gmra.mxu0 %v1770_v11  ;;  %v1537_v11 = vld [vmem:[#allocation5 + $0x70] sm:$0xff]  }
  0x40   :  { %599 = vmatpush1.bf16.msra.mxu0 %v1507_v30  ;;  %622 = vmatprep.mubr.bf16.mxu0 %v1651_v52  ;;  %v1554_v30 = vld [vmem:[#allocation5 + $0x8] sm:$0xff]  }
  0x41   :  { %600 = vmatprep.subr.bf16.mxu0 %v1512_v32  ;;  %v1556_v32 = vld [vmem:[#allocation5 + $0xa0] sm:$0xff]  }
  0x44   :  { %601 = vmatpush1.bf16.msra.mxu0 %v1510_v33 }
  0x45   :  { %602 = vmatprep.subr.bf16.mxu0 %v1515_v46  ;;  %v1567_v46 = vld [vmem:[#allocation5 + $0xc0] sm:$0xff]  }
  0x48   :  { %603 = vmatpush1.bf16.msra.mxu0 %v1513_v47  ;;  %v1569_v47 = vld [vmem:[#allocation5 + $0x80] sm:$0xff]  }
  0x49   :  { %604 = vmatprep.subr.bf16.mxu0 %v1518_v49 }
  0x4c   :  { %605 = vmatpush1.bf16.msra.mxu0 %v1516_v50 }
  0x4d   :  { %641 = vmatprep.subr.bf16.mxu0 %v1521_v51 }
  0xff   :  { %v178_v16 = vpop.f32.mrf.mxu0 }
 0x100   :  { %v179_v18 = vadd.f32 %v1210_v15, %v178_v16  ;;  %v1542_v16 = vld [vmem:[#allocation5 + $0x20] sm:$0xff]  }
 0x101   :  { %v1404_v17 = vpop.f32.mrf.mxu0 }
 0x102   :  { %v185_v22 = vmax.f32 %v179_v18, 0.0  ;;  %v1543_v17 = vld [vmem:[#allocation5 + $0xf8] sm:$0xff]  }
 0x103   :  { %v181_v19 = vpop.f32.mrf.mxu0  ;;  %v1544_v18 = vld [vmem:[#allocation5 + $0xb8] sm:$0xff]  }
 0x104   :  { %v182_v20 = vadd.f32 %v1210_v15, %v181_v19  ;;  %v1541_v15 = vld [vmem:[#allocation5 + $0x60] sm:$0xff]   ;;  %v1545_v19 = vld [vmem:[#allocation5 + $0x58] sm:$0xff]  }
 0x105   :  { %v1405_v21 = vpop.f32.mrf.mxu0 }
 0x106   :  { %v186_v23 = vmax.f32 %v182_v20, 0.0  ;;  %v1546_v20 = vld [vmem:[#allocation5 + $0x18] sm:$0xff]   ;;  %v1547_v21 = vld [vmem:[#allocation5 + $0xf0] sm:$0xff]  }
 0x108   :  { %v187_v25 = vpack.c.bf16 %v186_v23, %v185_v22  ;;  %v1548_v22 = vld [vmem:[#allocation5 + $0xb0] sm:$0xff]  }
 0x109   :  { %v1549_v23 = vld [vmem:[#allocation5 + $0x50] sm:$0xff]  }
 0x10a   :  { %1417 = vmatmul.mubr.msk.bf16.vlgmr.msra.gmra.mxu1 %vm235_vm1, %v187_v25  ;;  %v1550_v25 = vld [vmem:[#allocation5 + $0x10] sm:$0xff]  }
 0x10b   :  { %1421 = vmatpush3.bf16.msra.mxu1 %v1502_v24  ;;  %1430 = vmatprep.mubr.msk.bf16.mxu1 %vm1649_vm0, %v1648_v0  ;;  %v1485_v24 = vpop.permute.xlu1 %1484 }
 0x10c   :  { %1422 = vmatprep.subr.bf16.mxu1 %v1648_v0 }
 0x10f   :  { %1423 = vmatpush3.bf16.msra.mxu1 %v1503_v26  ;;  %v1551_v26 = vld [vmem:[#allocation5 + $0xe8] sm:$0xff]  }
 0x110   :  { %1424 = vmatprep.subr.bf16.mxu1 %v1648_v0 }
 0x113   :  { %1425 = vmatpush3.bf16.msra.mxu1 %v1504_v27  ;;  %v1552_v27 = vld [vmem:[#allocation5 + $0xa8] sm:$0xff]  }
 0x114   :  { %1426 = vmatprep.subr.bf16.mxu1 %v1648_v0 }
 0x117   :  { %1427 = vmatpush3.bf16.msra.mxu1 %v1505_v28  ;;  %v1486_v28 = vunpack.i.l.bf16 %v1485_v24 }
 0x118   :  { %1428 = vmatprep.subr.bf16.mxu1 %v1648_v0 }
 0x11b   :  { %1429 = vmatpush3.bf16.msra.mxu1 %v1506_v29  ;;  %v1553_v29 = vld [vmem:[#allocation5 + $0x48] sm:$0xff]  }
 0x11c   :  { %1333 = vmatprep.subr.bf16.mxu1 %v1535_v9 }
 0x1ca   :  { %v273_v35 = vpop.f32.mrf.mxu1 }
 0x1cb   :  { %v274_v37 = vadd.f32 %v1220_v34, %v273_v35 }
 0x1cc   :  { %v1418_v36 = vpop.f32.mrf.mxu1 }
 0x1cd   :  { %v280_v41 = vmax.f32 %v274_v37, 0.0  ;;  %v1557_v36 = vld [vmem:[#allocation5 + $0x40] sm:$0xff]  }
 0x1ce   :  { %v276_v38 = vpop.f32.mrf.mxu1  ;;  %v1558_v37 = vld [vmem:[#allocation5] sm:$0xff]  }
 0x1cf   :  { %v277_v39 = vadd.f32 %v1220_v34, %v276_v38  ;;  %v1487_v34 = vunpack.i.h.bf16 %v1485_v24  ;;  %v1559_v38 = vld [vmem:[#allocation5 + $0xd8] sm:$0xff]  }
 0x1d0   :  { %v1419_v40 = vpop.f32.mrf.mxu1 }
 0x1d1   :  { %v281_v42 = vmax.f32 %v277_v39, 0.0  ;;  %v1560_v39 = vld [vmem:[#allocation5 + $0x98] sm:$0xff]  }
 0x1d3   :  { %v282_v43 = vpack.c.bf16 %v281_v42, %v280_v41  ;;  %v1561_v42 = vld [vmem:[#allocation5 + $0xd0] sm:$0xff]  }
 0x1d5   :  { %1431 = vmatmul.mubr.msk.bf16.vlgmr.msra.gmra.mxu1 %vm235_vm1, %v282_v43  ;;  %v1563_v43 = vld [vmem:[#allocation5 + $0x90] sm:$0xff]  }
 0x1d6   :  { %1334 = vmatpush3.bf16.msra.mxu1 %v1536_v10 }
 0x1d7   :  { %1335 = vmatprep.subr.bf16.mxu1 %v1537_v11 }
 0x1da   :  { %1336 = vmatpush3.bf16.msra.mxu1 %v1538_v12 }
 0x1db   :  { %1337 = vmatprep.subr.bf16.mxu1 %v1539_v13 }
 0x1de   :  { %1338 = vmatpush3.bf16.msra.mxu1 %v1540_v14 }
 0x1df   :  { %1339 = vmatprep.subr.bf16.mxu1 %v1541_v15 }
 0x1e2   :  { %1340 = vmatpush3.bf16.msra.mxu1 %v1542_v16 }
 0x1e3   :  { %1341 = vmatprep.subr.bf16.mxu1 %v1545_v19 }
 0x1e6   :  { %1342 = vmatpush3.bf16.msra.mxu1 %v1546_v20 }
 0x1e7   :  { %1343 = vmatprep.subr.bf16.mxu1 %v1549_v23 }
 0x1ea   :  { %1344 = vmatpush3.bf16.msra.mxu1 %v1550_v25 }
 0x1eb   :  { %1345 = vmatprep.subr.bf16.mxu1 %v1553_v29 }
 0x1ee   :  { %1346 = vmatpush3.bf16.msra.mxu1 %v1554_v30 }
 0x1ef   :  { %1347 = vmatprep.subr.bf16.mxu1 %v1557_v36 }
 0x1f2   :  { %1348 = vmatpush3.bf16.msra.mxu1 %v1558_v37  ;;  %v1571_v37 = vld [vmem:[#allocation5 + $0x118] sm:$0xff]  }
 0x1f3   :  { %1446 = vmatprep.subr.bf16.mxu1 %v1648_v0 }
 0x295   :  { %v367_v54 = vpop.f32.mrf.mxu1 }
 0x296   :  { %v368_v55 = vadd.f32 %v1227_v53, %v367_v54 }
 0x297   :  { %v1432_v56 = vpop.f32.mrf.mxu1 }
 0x298   :  { %379 = vrot.lane.b32.xlu0 %v368_v55, %s1646_s23 }
 0x299   :  { %v370_v57 = vpop.f32.mrf.mxu1 }
 0x29a   :  { %v371_v58 = vadd.f32 %v1227_v53, %v370_v57 }
 0x29b   :  { %v1433_v59 = vpop.f32.mrf.mxu1 }
 0x29c   :  { %v374_v61 = vpack.c.bf16 %v371_v58, %v368_v55  ;;  %381 = vrot.lane.b32.xlu0 %v371_v58, %s1646_s23 }
 0x29e   :  { %1254 = vmatmul.mubr.msk.bf16.vlgmr.msra.gmra.mxu0 %vm448_vm2, %v374_v61 }
 0x29f   :  { %642 = vmatpush1.bf16.msra.mxu0 %v1519_v60  ;;  %665 = vmatprep.mubr.bf16.mxu0 %v1651_v52 }
 0x2a0   :  { %643 = vmatprep.subr.bf16.mxu0 %v1524_v62 }
 0x2a3   :  { %644 = vmatpush1.bf16.msra.mxu0 %v1522_v63 }
 0x2a4   :  { %645 = vmatprep.subr.bf16.mxu0 %v1527_v1 }
 0x2a7   :  { %646 = vmatpush1.bf16.msra.mxu0 %v1525_v2 }
 0x2a8   :  { %647 = vmatprep.subr.bf16.mxu0 %v1530_v3 }
 0x2ab   :  { %648 = vmatpush1.bf16.msra.mxu0 %v1528_v4 }
 0x2ac   :  { %1434 = vmatprep.subr.bf16.mxu0 %v1648_v0 }
 0x2ae   :  { %1255 = vmatmul.mubr.msk.bf16.vlgmr.msra.gmra.mxu0 %vm448_vm2, %v374_v61 }
 0x2af   :  { %1435 = vmatpush3.bf16.msra.mxu0 %v1531_v5  ;;  %1442 = vmatprep.mubr.msk.bf16.mxu0 %vm1649_vm0, %v1648_v0 }
 0x2b0   :  { %1436 = vmatprep.subr.bf16.mxu0 %v1648_v0 }
 0x2b3   :  { %1437 = vmatpush3.bf16.msra.mxu0 %v1532_v6 }
 0x2b4   :  { %1438 = vmatprep.subr.bf16.mxu0 %v1648_v0 }
 0x2b7   :  { %1439 = vmatpush3.bf16.msra.mxu0 %v1533_v7 }
 0x2b8   :  { %1440 = vmatprep.subr.bf16.mxu0 %v1648_v0 }
 0x2bb   :  { %1441 = vmatpush3.bf16.msra.mxu0 %v1534_v8 }
 0x2bc   :  { %1355 = vmatprep.subr.bf16.mxu0 %v1543_v17  ;;  %v1562_v17 = vld [vmem:[#allocation5 + $0x138] sm:$0xff]  }
 0x2be   :  { %1443 = vmatmul.mubr.msk.bf16.vlgmr.msra.gmra.mxu0 %vm448_vm2, %v374_v61 }
 0x2bf   :  { %1356 = vmatpush3.bf16.msra.mxu0 %v1544_v18 }
 0x2c0   :  { %1357 = vmatprep.subr.bf16.mxu0 %v1547_v21  ;;  %v1565_v21 = vld [vmem:[#allocation5 + $0x130] sm:$0xff]  }
 0x2c3   :  { %1358 = vmatpush3.bf16.msra.mxu0 %v1548_v22 }
 0x2c4   :  { %1359 = vmatprep.subr.bf16.mxu0 %v1551_v26 }
 0x2c7   :  { %1360 = vmatpush3.bf16.msra.mxu0 %v1552_v27 }
 0x2c8   :  { %1361 = vmatprep.subr.bf16.mxu0 %v1555_v31 }
 0x2cb   :  { %1362 = vmatpush3.bf16.msra.mxu0 %v1556_v32 }
 0x2cc   :  { %1363 = vmatprep.subr.bf16.mxu0 %v1559_v38  ;;  %v1572_v38 = vld [vmem:[#allocation5 + $0x110] sm:$0xff]  }
 0x2cf   :  { %1364 = vmatpush3.bf16.msra.mxu0 %v1560_v39 }
 0x2d0   :  { %1365 = vmatprep.subr.bf16.mxu0 %v1561_v42 }
 0x2d3   :  { %1366 = vmatpush3.bf16.msra.mxu0 %v1563_v43 }
 0x2d4   :  { %1367 = vmatprep.subr.bf16.mxu0 %v1564_v44  ;;  %v1574_v44 = vld [vmem:[#allocation5 + $0x100] sm:$0xff]  }
 0x2d7   :  { %1368 = vmatpush3.bf16.msra.mxu0 %v1566_v45 }
 0x2d8   :  { %1369 = vmatprep.subr.bf16.mxu0 %v1567_v46 }
 0x2db   :  { %1370 = vmatpush3.bf16.msra.mxu0 %v1569_v47 }
 0x30a   :  { %v380_v33 = vpop.permute.xlu0 %379 }
 0x30b   :  { %v1832_v35 = vsel %vm393_vm3, %v380_v33, %v1486_v28  ;;  %v1568_v28 = vld [vmem:[#allocation5 + $0x128] sm:$0xff]  }
 0x30c   :  { %398 = vrot.lane.b32.xlu1 %v1832_v35, %s1652_s6 }
 0x30e   :  { %v382_v40 = vpop.permute.xlu0 %381 }
 0x30f   :  { %v395_v41 = vsel %vm393_vm3, %v382_v40, %v1487_v34  ;;  %v1573_v40 = vld [vmem:[#allocation5 + $0x108] sm:$0xff]  }
 0x310   :  { %404 = vrot.lane.b32.xlu1 %v1832_v35, %s1653_s26  ;;  %400 = vrot.lane.b32.xlu0 %v395_v41, %s1652_s6 }
 0x314   :  { %410 = vrot.lane.b32.xlu1 %v1832_v35, %s1654_s7  ;;  %406 = vrot.lane.b32.xlu0 %v395_v41, %s1653_s26 }
 0x318   :  { %416 = vrot.lane.b32.xlu1 %v1832_v35, %s1646_s23  ;;  %412 = vrot.lane.b32.xlu0 %v395_v41, %s1654_s7 }
 0x31c   :  { %422 = vrot.lane.b32.xlu1 %v1832_v35, %s1655_s27  ;;  %418 = vrot.lane.b32.xlu0 %v395_v41, %s1646_s23 }
 0x320   :  { %428 = vrot.lane.b32.xlu1 %v1832_v35, %s1656_s8  ;;  %424 = vrot.lane.b32.xlu0 %v395_v41, %s1655_s27 }
 0x324   :  { %434 = vrot.lane.b32.xlu1 %v1832_v35, %s1657_s28  ;;  %430 = vrot.lane.b32.xlu0 %v395_v41, %s1656_s8 }
 0x328   :  { %436 = vrot.lane.b32.xlu0 %v395_v41, %s1657_s28 }
 0x35e   :  { %v624_v48 = vpop.f32.mrf.mxu0 }
 0x360   :  { %v626_v49 = vpop.f32.mrf.mxu0 }
 0x362   :  { %v628_v50 = vpop.f32.mrf.mxu0 }
 0x364   :  { %v630_v51 = vpop.f32.mrf.mxu0 }
 0x36e   :  { %v667_v52 = vpop.f32.mrf.mxu0 }
 0x370   :  { %v669_v53 = vpop.f32.mrf.mxu0 }
 0x372   :  { %v671_v54 = vpop.f32.mrf.mxu0 }
 0x374   :  { %v673_v55 = vpop.f32.mrf.mxu0 }
 0x37e   :  { %v1845_v56 = vpop.f32.mrf.mxu0  ;;  %v399_v57 = vpop.permute.xlu1 %398 }
 0x37f   :  { %v440_v6 = vsel %vm235_vm1, %v1832_v35, %v399_v57  ;;  %v1570_v35 = vld [vmem:[#allocation5 + $0x120] sm:$0xff]  }
 0x380   :  { %v1444_v58 = vpop.f32.mrf.mxu0  ;;  %v717_v13 = vmul.f32 %v624_v48, %v440_v6 }
 0x382   :  { %v1847_v59 = vpop.f32.mrf.mxu0  ;;  %v405_v60 = vpop.permute.xlu1 %404 }
 0x383   :  { %v401_v61 = vpop.permute.xlu0 %400  ;;  %v443_v2 = vsel %vm442_vm4, %v399_v57, %v405_v60 }
 0x384   :  { %v1445_v62 = vpop.f32.mrf.mxu0  ;;  %v441_v3 = vsel %vm235_vm1, %v395_v41, %v401_v61 }
 0x385   :  { %v722_v9 = vmul.f32 %v628_v50, %v441_v3 }
 0x386   :  { %v411_v63 = vpop.permute.xlu1 %410 }
 0x387   :  { %v407_v1 = vpop.permute.xlu0 %406  ;;  %v446_v4 = vsel %vm445_vm5, %v443_v2, %v411_v63  ;;  %v727_v18 = vpack.c.bf16 %v722_v9, %v717_v13 }
 0x388   :  { %v444_v7 = vsel %vm442_vm4, %v401_v61, %v407_v1  ;;  %v718_v11 = vmul.f32 %v626_v49, %v446_v4 }
 0x38a   :  { %v417_v5 = vpop.permute.xlu1 %416 }
 0x38b   :  { %v413_v8 = vpop.permute.xlu0 %412  ;;  %v449_v25 = vsel %vm448_vm2, %v411_v63, %v417_v5 }
 0x38c   :  { %v447_v10 = vsel %vm445_vm5, %v444_v7, %v413_v8  ;;  %v719_v33 = vmul.f32 %v667_v52, %v449_v25 }
 0x38d   :  { %v723_v12 = vmul.f32 %v630_v51, %v447_v10 }
 0x38e   :  { %v423_v14 = vpop.permute.xlu1 %422 }
 0x38f   :  { %v419_v15 = vpop.permute.xlu0 %418  ;;  %v728_v16 = vpack.c.bf16 %v723_v12, %v718_v11  ;;  %v451_v22 = vsel %vm393_vm3, %v417_v5, %v423_v14 }
 0x390   :  { %v450_v23 = vsel %vm448_vm2, %v413_v8, %v419_v15 }
 0x391   :  { %1091 = vmatprep.mubr.bf16.mxu1 %v728_v16  ;;  %v724_v29 = vmul.f32 %v671_v54, %v450_v23 }
 0x392   :  { %1092 = vmatmul.mubr.bf16.vlgmr.msra.gmra.mxu1 %v727_v18  ;;  %v429_v19 = vpop.permute.xlu1 %428 }
 0x393   :  { %1447 = vmatpush3.bf16.msra.mxu1 %v1562_v17  ;;  %v425_v20 = vpop.permute.xlu0 %424  ;;  %1462 = vmatprep.mubr.msk.bf16.mxu1 %vm1649_vm0, %v1648_v0  ;;  %v454_v24 = vsel %vm453_vm6, %v451_v22, %v429_v19  ;;  %v729_v36 = vpack.c.bf16 %v724_v29, %v719_v33 }
 0x394   :  { %1448 = vmatprep.subr.bf16.mxu1 %v1648_v0  ;;  %v452_v26 = vsel %vm393_vm3, %v419_v15, %v425_v20  ;;  %v720_v31 = vmul.f32 %v669_v53, %v454_v24 }
 0x396   :  { %v435_v41 = vpop.permute.xlu1 %434 }
 0x397   :  { %1449 = vmatpush3.bf16.msra.mxu1 %v1565_v21  ;;  %v431_v27 = vpop.permute.xlu0 %430  ;;  %v457_v43 = vsel %vm456_vm7, %v429_v19, %v435_v41 }
 0x398   :  { %v455_v30 = vsel %vm453_vm6, %v452_v26, %v431_v27  ;;  %1450 = vmatprep.subr.bf16.mxu1 %v1648_v0  ;;  %v721_v46 = vmul.f32 %v1845_v56, %v457_v43 }
 0x399   :  { %v725_v32 = vmul.f32 %v673_v55, %v455_v30 }
 0x39b   :  { %1451 = vmatpush3.bf16.msra.mxu1 %v1568_v28  ;;  %v730_v34 = vpack.c.bf16 %v725_v32, %v720_v31  ;;  %v437_v39 = vpop.permute.xlu0 %436 }
 0x39c   :  { %1452 = vmatprep.subr.bf16.mxu1 %v1648_v0  ;;  %v458_v42 = vsel %vm456_vm7, %v431_v27, %v437_v39 }
 0x39d   :  { %1132 = vmatprep.mubr.bf16.mxu0 %v730_v34  ;;  %v726_v45 = vmul.f32 %v1847_v59, %v458_v42  ;;  %v1257_v59 = vld [vmem:[%s1885_s9] ss:$0 sm:$0xff] }
 0x39e   :  { %1133 = vmatmul.mubr.bf16.vlgmr.msra.gmra.mxu0 %v729_v36 }
 0x39f   :  { %1453 = vmatpush3.bf16.msra.mxu1 %v1570_v35  ;;  %v731_v47 = vpack.c.bf16 %v726_v45, %v721_v46 }
 0x3a0   :  { %1454 = vmatprep.subr.bf16.mxu1 %v1648_v0 }
 0x3a3   :  { %1455 = vmatpush3.bf16.msra.mxu1 %v1571_v37 }
 0x3a4   :  { %1456 = vmatprep.subr.bf16.mxu1 %v1648_v0 }
 0x3a7   :  { %1457 = vmatpush3.bf16.msra.mxu1 %v1572_v38 }
 0x3a8   :  { %1458 = vmatprep.subr.bf16.mxu1 %v1648_v0 }
 0x3ab   :  { %1459 = vmatpush3.bf16.msra.mxu1 %v1573_v40 }
 0x3ac   :  { %1460 = vmatprep.subr.bf16.mxu1 %v1648_v0 }
 0x3af   :  { %1461 = vmatpush3.bf16.msra.mxu1 %v1574_v44 }
 0x3b2   :  { %1463 = vmatmul.mubr.bf16.vlgmr.msra.gmra.mxu1 %v731_v47 }
 0x452   :  { %v1349_v48 = vpop.f32.mrf.mxu1 }
 0x454   :  { %v1350_v50 = vpop.f32.mrf.mxu1 }
 0x455   :  { %v1351_v57 = vadd.f32 %v1350_v50, %v1349_v48 }
 0x456   :  { %v1352_v52 = vpop.f32.mrf.mxu1 }
 0x457   :  { %v1094_v61 = vadd.f32 %v1351_v57, %v1257_v59 }
 0x458   :  { %v1353_v54 = vpop.f32.mrf.mxu1 }
 0x459   :  { %v1354_v58 = vadd.f32 %v1353_v54, %v1352_v52 }
 0x45b   :  { %v1097_v62 = vadd.f32 %v1354_v58, %v1257_v59 }
 0x45e   :  { %v1371_v49 = vpop.f32.mrf.mxu0 }
 0x460   :  { %v1372_v51 = vpop.f32.mrf.mxu0 }
 0x461   :  { %v1373_v0 = vadd.f32 %v1372_v51, %v1371_v49 }
 0x462   :  { %v1374_v53 = vpop.f32.mrf.mxu0 }
 0x463   :  { %v1135_v1 = vadd.f32 %v1373_v0, %v1094_v61 }
 0x464   :  { %v1375_v55 = vpop.f32.mrf.mxu0 }
 0x465   :  { %v1376_v60 = vadd.f32 %v1375_v55, %v1374_v53 }
 0x467   :  { %v1138_v2 = vadd.f32 %v1376_v60, %v1097_v62 }
 0x472   :  { %v1175_v56 = vpop.f32.mrf.mxu1 }
 0x473   :  { %v1176_v4 = vadd.f32 %v1175_v56, %v1135_v1 }
 0x474   :  { %v1464_v63 = vpop.f32.mrf.mxu1 }
 0x476   :  { %v1178_v3 = vpop.f32.mrf.mxu1 }
 0x477   :  { %v1179_v5 = vadd.f32 %v1178_v3, %v1138_v2 }
 0x478   :  { %v1465_v6 = vpop.f32.mrf.mxu1 }
 0x479   :  { %v1305_v7 = vpack.c.bf16 %v1179_v5, %v1176_v4 }
 0x47b   :  { %1306 = vst [vmem:[#allocation7] sm:$0xff] %v1305_v7  }
 0x47c   :  { %1627 = shalt.err (!%p1624_p0)
}
 0x47d   :  { %1203 = dma.vmem_to_hbm [thread:$0]  %s1198_s30, 128, %s1886_s10, [#allocation4], %s1646_s23, %s1646_s23, %s1647_s24  }
 0x47e   :  { %1640 = dma.done.wait [#allocation4], 128  }
 0x47f   :  { %1641 = vsyncadd [#allocation4], 4294967168 }
 0x480   :  { %1207 = vsyncpa [#allocation3], 1 }
 0x481   :  { %1208 = vsyncpa [#allocation6], 1 }
 0x482   :  { %1209 = vsyncpa [#allocation4], 1 }

</bundles_post_ra>
